<compile_context>
chip_gen: v6e
topology: v6e:2x2x1
jax: 0.10.0
libtpu: 0.0.40
codegen_flags: <defaults>
</compile_context>

<pallas_src>
import jax
import jax.numpy as jnp
from jax.experimental import pallas as pl
from jax.experimental.pallas import tpu as pltpu


def rbm_forward_kernel(v_ref, wt_ref, hb_ref, u_ref, h_ref):
    # v: (TB, K), wt: (K, N), hb: (1, N), u: (TB, N), h: (TB, N)
    logits = jnp.dot(
        v_ref[...], wt_ref[...], preferred_element_type=jnp.float32
    ) + hb_ref[...]
    p_h = jax.nn.sigmoid(logits)
    # relu(sign(p - u)) == 1.0 where p > u, else 0.0 (tie -> 0). Strict '>'.
    h_ref[...] = jnp.where(p_h > u_ref[...], 1.0, 0.0).astype(h_ref.dtype)


def _round_up(x, m):
    return (x + m - 1) // m * m


def rbm_forward(v, W, h_bias, u, *, max_block_b=512):
    """Pallas-backed RBM forward: returns sampled hidden units h (B, n_hin)."""
    B, n_vis = v.shape
    n_hin = W.shape[0]

    # Lane-dense padding: feature dims to multiples of 128, batch to the tile.
    n_vis_p = _round_up(n_vis, 128)
    n_hin_p = _round_up(n_hin, 128)
    tb = min(max_block_b, _round_up(B, 8))      # batch tile, multiple of 8
    B_p = _round_up(B, tb)

    f32 = jnp.float32
    v_p = jnp.zeros((B_p, n_vis_p), f32).at[:B, :n_vis].set(v.astype(f32))
    # Pre-transpose W once: (n_hin, n_vis) -> (K, N) = (n_vis_p, n_hin_p).
    wt_p = jnp.zeros((n_vis_p, n_hin_p), f32).at[:n_vis, :n_hin].set(
        W.astype(f32).T)
    hb_p = jnp.zeros((1, n_hin_p), f32).at[0, :n_hin].set(h_bias.astype(f32))
    # Pad u with 1.0 so padded hidden lanes never sample to 1 (p <= 1 !> 1).
    u_p = jnp.ones((B_p, n_hin_p), f32).at[:B, :n_hin].set(u.astype(f32))

    grid = (B_p // tb,)
    out = pl.pallas_call(
        rbm_forward_kernel,
        out_shape=jax.ShapeDtypeStruct((B_p, n_hin_p), f32),
        grid_spec=pltpu.PrefetchScalarGridSpec(
            num_scalar_prefetch=0,
            grid=grid,
            in_specs=[
                pl.BlockSpec((tb, n_vis_p), lambda i: (i, 0)),       # v tiles
                pl.BlockSpec((n_vis_p, n_hin_p), lambda i: (0, 0)),  # W.T resident
                pl.BlockSpec((1, n_hin_p), lambda i: (0, 0)),        # bias resident
                pl.BlockSpec((tb, n_hin_p), lambda i: (i, 0)),       # u tiles
            ],
            out_specs=pl.BlockSpec((tb, n_hin_p), lambda i: (i, 0)),
        ),
        compiler_params=pltpu.CompilerParams(
            dimension_semantics=("parallel",),
        ),
    )(v_p, wt_p, hb_p, u_p)

    # Slice padded batch rows / hidden lanes back out.
    return out[:B, :n_hin]


def rbm_forward_ref(v, W, h_bias, u):
    """Pure-JAX reference for correctness checking."""
    logits = jnp.dot(v, W.T, preferred_element_type=jnp.float32) + h_bias[None, :]
    p_h = jax.nn.sigmoid(logits)
    return p_h, jnp.where(p_h > u, 1.0, 0.0).astype(jnp.float32)


if __name__ == "__main__":
    # Module defaults: n_vis=64, n_hin=100. Small batch.
    n_vis, n_hin, batch = 64, 100, 8

    key = jax.random.PRNGKey(0)
    k_w, k_v, k_u = jax.random.split(key, 3)

    # Deterministic parameter init mirroring RBM.__init__:
    #   W = randn(n_hin, n_vis) * 0.01 ; v_bias = zeros ; h_bias = zeros
    W = jax.random.normal(k_w, (n_hin, n_vis), dtype=jnp.float32) * 0.01
    v_bias = jnp.zeros((n_vis,), dtype=jnp.float32)   # unused in forward
    h_bias = jnp.zeros((n_hin,), dtype=jnp.float32)

    # Example visible units (binary-ish configurations).
    v = (jax.random.uniform(k_v, (batch, n_vis), dtype=jnp.float32) > 0.5
         ).astype(jnp.float32)

    # Uniform noise standing in for torch.rand(p.size()).
    u = jax.random.uniform(k_u, (batch, n_hin), dtype=jnp.float32)

    h = rbm_forward(v, W, h_bias, u)
    h = jax.block_until_ready(h)

    p_ref, h_ref = rbm_forward_ref(v, W, h_bias, u)
    assert h.shape == (batch, n_hin)
    assert h.dtype == jnp.float32
    # Exact match except (at most) where p_h is a floating-point near-tie with u.
    near_tie = jnp.abs(p_ref - u) < 1e-5
    assert bool(jnp.all((h == h_ref) | near_tie)), \
        "Pallas kernel mismatch vs JAX reference"

    print("KERNEL_OK")
</pallas_src>

<mosaic_0001>
module attributes {stable_mosaic.version = 11 : i64} {
  func.func @rbm_forward_kernel(%arg0: i32, %arg1: memref<8x128xf32, #tpu.memory_space<vmem>>, %arg2: memref<128x128xf32, #tpu.memory_space<vmem>>, %arg3: memref<1x128xf32, #tpu.memory_space<vmem>>, %arg4: memref<8x128xf32, #tpu.memory_space<vmem>>, %arg5: memref<8x128xf32, #tpu.memory_space<vmem>>) attributes {dimension_semantics = [#tpu.dimension_semantics<parallel>], iteration_bounds = array<i64: 1>, scalar_prefetch = 0 : i64, scratch_operands = 0 : i64, tpu.core_type = #tpu.core_type<tc>, window_params = [{transform_indices = @transform_0, window_bounds = array<i64: 8, 128>}, {pipeline_mode = #tpu.pipeline_mode<synchronous>, transform_indices = @transform_1, window_bounds = array<i64: 128, 128>}, {pipeline_mode = #tpu.pipeline_mode<synchronous>, transform_indices = @transform_2, window_bounds = array<i64: 1, 128>}, {transform_indices = @transform_3, window_bounds = array<i64: 8, 128>}, {transform_indices = @transform_4, window_bounds = array<i64: 8, 128>}]} {
    %c0 = arith.constant 0 : index
    %c0_0 = arith.constant 0 : index
    %0 = vector.load %arg1[%c0, %c0_0] : memref<8x128xf32, #tpu.memory_space<vmem>>, vector<8x128xf32>
    %c0_1 = arith.constant 0 : index
    %c0_2 = arith.constant 0 : index
    %1 = vector.load %arg2[%c0_1, %c0_2] : memref<128x128xf32, #tpu.memory_space<vmem>>, vector<128x128xf32>
    %cst = arith.constant dense<0.000000e+00> : vector<8x128xf32>
    %2 = tpu.matmul %0, %1, %cst {dimension_numbers = #tpu.dot_dimension_numbers<[1], [0], [0], [1], [0, 0, 1, 1], [], []>} : vector<8x128xf32>, vector<128x128xf32>, vector<8x128xf32> -> vector<8x128xf32>
    %c0_3 = arith.constant 0 : index
    %c0_4 = arith.constant 0 : index
    %3 = vector.load %arg3[%c0_3, %c0_4] : memref<1x128xf32, #tpu.memory_space<vmem>>, vector<1x128xf32>
    %4 = vector.broadcast %3 : vector<1x128xf32> to vector<8x128xf32>
    %5 = arith.addf %2, %4 : vector<8x128xf32>
    %6 = arith.negf %5 : vector<8x128xf32>
    %7 = math.exp %6 : vector<8x128xf32>
    %cst_5 = arith.constant 1.000000e+00 : f32
    %8 = vector.broadcast %cst_5 : f32 to vector<8x128xf32>
    %9 = arith.addf %8, %7 : vector<8x128xf32>
    %10 = arith.divf %8, %9 : vector<8x128xf32>
    %c0_6 = arith.constant 0 : index
    %c0_7 = arith.constant 0 : index
    %11 = vector.load %arg4[%c0_6, %c0_7] : memref<8x128xf32, #tpu.memory_space<vmem>>, vector<8x128xf32>
    %12 = arith.cmpf ogt, %10, %11 : vector<8x128xf32>
    %cst_8 = arith.constant 1.000000e+00 : f32
    %cst_9 = arith.constant 0.000000e+00 : f32
    %13 = vector.broadcast %cst_8 : f32 to vector<8x128xf32>
    %14 = vector.broadcast %cst_9 : f32 to vector<8x128xf32>
    %15 = arith.select %12, %13, %14 : vector<8x128xi1>, vector<8x128xf32>
    %c0_10 = arith.constant 0 : index
    %c0_11 = arith.constant 0 : index
    %16 = vector.load %arg5[%c0_10, %c0_11] : memref<8x128xf32, #tpu.memory_space<vmem>>, vector<8x128xf32>
    tpu.vector_store %arg5[%c0_10, %c0_11], %15 {strides = array<i32>} : memref<8x128xf32, #tpu.memory_space<vmem>>, vector<8x128xf32>,
    return
  }
  func.func @transform_0(%arg0: i32) -> (i32, i32) {
    %c0_i32 = arith.constant 0 : i32
    %c0_i32_0 = arith.constant 0 : i32
    return %arg0, %c0_i32 : i32, i32
  }
  func.func @transform_1(%arg0: i32) -> (i32, i32) {
    %c0_i32 = arith.constant 0 : i32
    %c0_i32_0 = arith.constant 0 : i32
    %c0_i32_1 = arith.constant 0 : i32
    return %c0_i32, %c0_i32_0 : i32, i32
  }
  func.func @transform_2(%arg0: i32) -> (i32, i32) {
    %c0_i32 = arith.constant 0 : i32
    %c0_i32_0 = arith.constant 0 : i32
    %c0_i32_1 = arith.constant 0 : i32
    return %c0_i32, %c0_i32_0 : i32, i32
  }
  func.func @transform_3(%arg0: i32) -> (i32, i32) {
    %c0_i32 = arith.constant 0 : i32
    %c0_i32_0 = arith.constant 0 : i32
    return %arg0, %c0_i32 : i32, i32
  }
  func.func @transform_4(%arg0: i32) -> (i32, i32) {
    %c0_i32 = arith.constant 0 : i32
    %c0_i32_0 = arith.constant 0 : i32
    return %arg0, %c0_i32 : i32, i32
  }
}

</mosaic_0001>

<bundles_post_ra>
// kernel: tpu_custom_call.1
= control target key start
LH: loop header
LB: loop body
LE: loop exit
PB: predicated region body
PF: predicated region fallthrough
CT: control target
= control target key end

     0   :  { %9 = vsyncpa [#allocation3], 0  ;;  %s393_s0 = inlined_call_operand.hbm [shape: f32[8,128], index: 0, kind: input, shape index: {}]   ;;  %s394_s1 = inlined_call_operand.hbm [shape: f32[128,128], index: 1, kind: input, shape index: {}]   ;;  %s395_s2 = inlined_call_operand.vmem [shape: f32[1,128], index: 2, kind: input, shape index: {}]   ;;  %s396_s3 = inlined_call_operand.hbm [shape: f32[8,128], index: 3, kind: input, shape index: {}]   ;;  %s397_s4 = inlined_call_operand.hbm [shape: f32[8,128], index: 4, kind: output, shape index: {}]  }
   0x1   :  { %10 = vsyncpa [#allocation6], 0 }
   0x2   :  { %11 = vsyncpa [#allocation4], 0  ;;  %s327_s15 = smov [#allocation5]  }
   0x3   :  { %s27_s16 = sshll.u32 %s327_s15, 4  ;;  %s28_s16 = int_to_ptr.vmem [resolvable:$true] %s27_s16 }
   0x4   :  { %s249_s17 = scalar_lea.vmem %s28_s16, 2048  ;;  %p254_p1 = scmp.lt.s32.totalorder %s28_s16, %s28_s16 }
   0x5   :  { %p250_p0 = scmp.ne.s32.totalorder %s28_s16, %s249_s17  ;;  %p255_p2 = scmp.lt.s32.totalorder %s249_s17, %s249_s17 }
   0x7   :  { %p256_p3 = por %p255_p2, %p254_p1 }
   0x9   :  { %p257_p4 = pnand %p256_p3, %p250_p0 }
   0xb   :  { %260 = shalt.err (!%p257_p4)
}
   0xc   :  { %s328_s18 = smov 128   ;;  %s329_s19 = smov 8  }
   0xd   :  { %33 = dma.hbm_to_vmem [thread:$0]  %s394_s1, 2048, %s28_s16, [#allocation6], %s328_s18, %s328_s18, %s329_s19  }
   0xe   :  { %s330_s22 = smov [#allocation2]   ;;  %s331_s24 = smov [#allocation7]  }
   0xf   :  { %s18_s23 = sshll.u32 %s330_s22, 4  ;;  %s42_s25 = sshll.u32 %s331_s24, 4  ;;  %s19_s23 = int_to_ptr.vmem [resolvable:$true] %s18_s23  ;;  %s43_s25 = int_to_ptr.vmem [resolvable:$true] %s42_s25 }
  0x10   :  { %s269_s26 = scalar_lea.vmem %s19_s23, 128  ;;  %p274_p6 = scmp.lt.s32.totalorder %s19_s23, %s19_s23 }
  0x11   :  { %p270_p5 = scmp.ne.s32.totalorder %s19_s23, %s269_s26  ;;  %p275_p7 = scmp.lt.s32.totalorder %s269_s26, %s269_s26 }
  0x13   :  { %p276_p8 = por %p275_p7, %p274_p6 }
  0x15   :  { %p277_p9 = pnand %p276_p8, %p270_p5 }
  0x17   :  { %280 = shalt.err (!%p277_p9)
}
  0x18   :  { %21 = dma.hbm_to_vmem [thread:$0]  %s393_s0, 128, %s19_s23, [#allocation3]  }
  0x19   :  { %s289_s29 = scalar_lea.vmem %s43_s25, 128  ;;  %p294_p11 = scmp.lt.s32.totalorder %s43_s25, %s43_s25 }
  0x1a   :  { %p290_p10 = scmp.ne.s32.totalorder %s43_s25, %s289_s29  ;;  %p295_p12 = scmp.lt.s32.totalorder %s289_s29, %s289_s29 }
  0x1c   :  { %p296_p13 = por %p295_p12, %p294_p11 }
  0x1e   :  { %p297_p0 = pnand %p296_p13, %p290_p10 }
  0x20   :  { %300 = shalt.err (!%p297_p0)
}
  0x21   :  { %45 = dma.hbm_to_vmem [thread:$0]  %s396_s3, 128, %s43_s25, [#allocation6]  }
  0x22   :  { %321 = dma.done.wait [#allocation3], 128  }
  0x23   :  { %322 = vsyncadd [#allocation3], 4294967168 }
  0x24   :  { %323 = dma.done.wait [#allocation6], 2176  }
  0x25   :  { %324 = vsyncadd [#allocation6], 4294965120  ;;  %v332_v0 = vmov 0.0   ;;  %vm333_vm0 = vmmov 0   ;;  %v71_v1 = vld [vmem:[#allocation5 + $0x78] sm:$0xff]  ;;  %v70_v2 = vld [vmem:[#allocation5 + $0x70] sm:$0xff] }
  0x26   :  { %194 = vmatprep.subr.mxu0 %v332_v0  ;;  %226 = vmatprep.mubr.msk.f32.mxu0 %vm333_vm0, %v332_v0  ;;  %v69_v3 = vld [vmem:[#allocation5 + $0x68] sm:$0xff]  ;;  %v68_v4 = vld [vmem:[#allocation5 + $0x60] sm:$0xff]  ;;  %v67_v5 = vld [vmem:[#allocation5 + $0x58] sm:$0xff]  ;;  %s334_s5 = smov [#allocation8]  }
  0x27   :  { %195 = vmatpush3.msra.mxu0 %v71_v1  ;;  %v66_v6 = vld [vmem:[#allocation5 + $0x50] sm:$0xff]  ;;  %v65_v7 = vld [vmem:[#allocation5 + $0x48] sm:$0xff]  ;;  %v64_v8 = vld [vmem:[#allocation5 + $0x40] sm:$0xff]  ;;  %s165_s6 = sshll.u32 %s334_s5, 4  ;;  %s166_s6 = int_to_ptr.vmem [resolvable:$true] %s165_s6 }
  0x28   :  { %196 = vmatprep.subr.mxu0 %v332_v0  ;;  %v63_v9 = vld [vmem:[#allocation5 + $0x38] sm:$0xff]  ;;  %v62_v10 = vld [vmem:[#allocation5 + $0x30] sm:$0xff]  ;;  %v61_v11 = vld [vmem:[#allocation5 + $0x28] sm:$0xff]  ;;  %s301_s7 = scalar_lea.vmem %s166_s6, 128  ;;  %p306_p2 = scmp.lt.s32.totalorder %s166_s6, %s166_s6 }
  0x29   :  { %197 = vmatpush3.msra.mxu0 %v70_v2  ;;  %v60_v12 = vld [vmem:[#allocation5 + $0x20] sm:$0xff]  ;;  %v59_v13 = vld [vmem:[#allocation5 + $0x18] sm:$0xff]  ;;  %v58_v14 = vld [vmem:[#allocation5 + $0x10] sm:$0xff]  ;;  %p302_p1 = scmp.ne.s32.totalorder %s166_s6, %s301_s7  ;;  %p307_p3 = scmp.lt.s32.totalorder %s301_s7, %s301_s7 }
  0x2a   :  { %198 = vmatprep.subr.mxu0 %v332_v0  ;;  %v57_v15 = vld [vmem:[#allocation5 + $0x8] sm:$0xff]  ;;  %v56_v16 = vld [vmem:[#allocation5] sm:$0xff]  ;;  %v55_v17 = vld [vmem:[#allocation2] sm:$0xff] }
  0x2b   :  { %199 = vmatpush3.msra.mxu0 %v69_v3  ;;  %v175_v18 = vld [vmem:[%s395_s2] ss:$0 sm:$0xff]  ;;  %v155_v25 = vld [vmem:[#allocation7] sm:$0xff]  ;;  %p308_p4 = por %p307_p3, %p306_p2 }
  0x2c   :  { %200 = vmatprep.subr.mxu0 %v332_v0 }
  0x2d   :  { %201 = vmatpush3.msra.mxu0 %v68_v4  ;;  %p309_p5 = pnand %p308_p4, %p302_p1 }
  0x2e   :  { %202 = vmatprep.subr.mxu0 %v332_v0 }
  0x2f   :  { %203 = vmatpush3.msra.mxu0 %v67_v5 }
  0x30   :  { %204 = vmatprep.subr.mxu0 %v332_v0 }
  0x31   :  { %205 = vmatpush3.msra.mxu0 %v66_v6 }
  0x32   :  { %206 = vmatprep.subr.mxu0 %v332_v0 }
  0x33   :  { %207 = vmatpush3.msra.mxu0 %v65_v7 }
  0x34   :  { %208 = vmatprep.subr.mxu0 %v332_v0 }
  0x35   :  { %209 = vmatpush3.msra.mxu0 %v64_v8 }
  0x36   :  { %210 = vmatprep.subr.mxu0 %v332_v0 }
  0x37   :  { %211 = vmatpush3.msra.mxu0 %v63_v9 }
  0x38   :  { %212 = vmatprep.subr.mxu0 %v332_v0 }
  0x39   :  { %213 = vmatpush3.msra.mxu0 %v62_v10 }
  0x3a   :  { %214 = vmatprep.subr.mxu0 %v332_v0 }
  0x3b   :  { %215 = vmatpush3.msra.mxu0 %v61_v11 }
  0x3c   :  { %216 = vmatprep.subr.mxu0 %v332_v0 }
  0x3d   :  { %217 = vmatpush3.msra.mxu0 %v60_v12 }
  0x3e   :  { %218 = vmatprep.subr.mxu0 %v332_v0 }
  0x3f   :  { %219 = vmatpush3.msra.mxu0 %v59_v13 }
  0x40   :  { %220 = vmatprep.subr.mxu0 %v332_v0 }
  0x41   :  { %221 = vmatpush3.msra.mxu0 %v58_v14 }
  0x42   :  { %222 = vmatprep.subr.mxu0 %v332_v0 }
  0x43   :  { %223 = vmatpush3.msra.mxu0 %v57_v15 }
  0x44   :  { %224 = vmatprep.subr.mxu0 %v332_v0 }
  0x45   :  { %225 = vmatpush3.msra.mxu0 %v56_v16 }
  0x46   :  { %227 = vmatmul.mubr.f32.vlgmr.msra.gmra.mxu0 %v55_v17 }
 0x106   :  { %v145_v19 = vpop.f32.mrf.mxu0 }
 0x107   :  { %v146_v20 = vadd.f32 %v175_v18, %v145_v19 }
 0x108   :  { %v228_v21 = vpop.f32.mrf.mxu0 }
 0x109   :  { %v176_v22 = vmul.f32 -1.442695, %v146_v20 }
 0x10b   :  { %237 = vpow2.f32 %v176_v22 }
 0x118   :  { %v238_v23 = vpop.eup %237 }
 0x119   :  { %v152_v24 = vadd.f32 1.0, %v238_v23 }
 0x11b   :  { %239 = vrcp.f32 %v152_v24 }
 0x128   :  { %v240_v26 = vpop.eup %239 }
 0x129   :  { %vm156_vm1 = vcmp.gt.f32.partialorder %v240_v26, %v155_v25 }
 0x12a   :  { %v157_v27 = vsel %vm156_vm1, 1.0, %v332_v0 }
 0x12b   :  { %158 = vst [vmem:[#allocation8] sm:$0xff] %v157_v27 }
 0x12c   :  { %312 = shalt.err (!%p309_p5)
}
 0x12d   :  { %168 = dma.vmem_to_hbm [thread:$0]  %s166_s6, 128, %s397_s4, [#allocation4]  }
 0x12e   :  { %325 = dma.done.wait [#allocation4], 128  }
 0x12f   :  { %326 = vsyncadd [#allocation4], 4294967168 }
 0x130   :  { %172 = vsyncpa [#allocation3], 1 }
 0x131   :  { %173 = vsyncpa [#allocation6], 1 }
 0x132   :  { %174 = vsyncpa [#allocation4], 1 }

</bundles_post_ra>
